<compile_context>
chip_gen: v5e
topology: v5e:2x2
jax: 0.10.0
libtpu: 0.0.40
codegen_flags: <defaults>
</compile_context>

<pallas_src>
import math
from functools import partial

import jax
import jax.numpy as jnp
from jax.experimental import pallas as pl
from jax.experimental.pallas import tpu as pltpu


def _round_down(x, m):
    return (x // m) * m


def _edgewise_scatter_sum_kernel(dst_ref, feat_ref, out_ref, acc_ref, *,
                                 num_edges, factor, compute_dtype):
    """Grid = (node_blocks ["parallel"], edge_tiles ["arbitrary" reduction]).

    dst_ref : (TE, 1) int32   destination node of each edge in this tile
    feat_ref: (TE, D)         per-edge features for this tile
    out_ref : (TN, D)         per-node output block (resident across edge axis)
    acc_ref : (TN, D) f32     VMEM accumulator scratch
    """
    n = pl.program_id(0)          # node-block index
    e = pl.program_id(1)          # edge-tile index (reduction axis)

    te = feat_ref.shape[0]
    tn = out_ref.shape[0]

    @pl.when(e == 0)
    def _init():
        acc_ref[...] = jnp.zeros_like(acc_ref)

    # Mask the ragged final edge tile (no host-side padding of the arrays).
    edge_ids = e * te + jax.lax.broadcasted_iota(jnp.int32, (te, 1), 0)
    valid = edge_ids < num_edges                        # (TE, 1) bool

    dst = jnp.where(valid, dst_ref[...], -1)            # invalid rows never match
    feat = jnp.where(valid, feat_ref[...], 0)           # zero garbage (NaN/Inf safe)

    # One-hot scatter matrix restricted to this node block:
    #   onehot[e, j] = (dst[e] == n*TN + j)
    node_ids = n * tn + jax.lax.broadcasted_iota(jnp.int32, (te, tn), 1)
    onehot = (dst == node_ids).astype(compute_dtype)    # (TE, TN)

    # (TN, D) += onehot^T @ feats   (contract over the edge axis on the MXU)
    acc_ref[...] += jax.lax.dot_general(
        onehot, feat.astype(compute_dtype),
        dimension_numbers=(((0,), (0,)), ((), ())),
        preferred_element_type=jnp.float32,
    )

    @pl.when(e == pl.num_programs(1) - 1)
    def _finalize():
        acc = acc_ref[...]
        if factor is not None:
            acc = acc * jnp.float32(factor)
        out_ref[...] = acc.astype(out_ref.dtype)


def edgewise_reduce_sum(edge_feat, edge_dst, num_nodes, factor=None,
                        tile_edges=256, tile_nodes=256, compute_dtype=None):
    """Pallas scatter-sum of per-edge features into per-node features.

    edge_feat: (E, D) float32 / bfloat16
    edge_dst : (E,)   int     destination node index of every edge
    returns  : (num_nodes, D) same dtype as edge_feat
    """
    E, D = edge_feat.shape
    out_dtype = edge_feat.dtype
    if compute_dtype is None:
        # bf16 one-hot + bf16 features -> single-pass MXU; f32 stays exact.
        compute_dtype = (jnp.bfloat16 if edge_feat.dtype == jnp.bfloat16
                         else jnp.float32)

    # Keep the edge extent >= 8 so an 8-aligned tile never exceeds the array.
    # (Only copies for E < 8; normal inputs are passed through untouched.)
    if E < 8:
        pad = 8 - E
        edge_feat = jnp.pad(edge_feat, ((0, pad), (0, 0)))
        edge_dst = jnp.pad(edge_dst.astype(jnp.int32), (0, pad),
                           constant_values=-1)
        e_arr = 8
    else:
        e_arr = E

    te = max(8, min(tile_edges, _round_down(e_arr, 8)))     # 8-aligned, <= E
    tn = min(tile_nodes, num_nodes)                          # <= 256 or full N

    n_edge_tiles = pl.cdiv(e_arr, te)
    n_node_blocks = pl.cdiv(num_nodes, tn)

    dst2d = edge_dst.astype(jnp.int32).reshape(e_arr, 1)

    kernel = partial(
        _edgewise_scatter_sum_kernel,
        num_edges=E, factor=factor, compute_dtype=compute_dtype,
    )

    # Rough VMEM budget: f32 acc + double-buffered out/feat/dst tiles + one-hot.
    itemsize = jnp.dtype(edge_feat.dtype).itemsize
    c_itemsize = jnp.dtype(compute_dtype).itemsize
    est = (tn * D * 4                 # accumulator scratch (f32)
           + 2 * tn * D * itemsize    # double-buffered output block
           + 2 * te * D * itemsize    # double-buffered feature tiles
           + 2 * te * 4               # dst tiles
           + te * tn * c_itemsize     # one-hot intermediate
           + (4 << 20))               # headroom
    vmem_limit = int(min(max(est, 32 << 20), 56 << 20))      # stays < v7x 64 MiB

    return pl.pallas_call(
        kernel,
        out_shape=jax.ShapeDtypeStruct((num_nodes, D), out_dtype),
        grid_spec=pltpu.PrefetchScalarGridSpec(
            num_scalar_prefetch=0,
            grid=(n_node_blocks, n_edge_tiles),
            in_specs=[
                pl.BlockSpec((te, 1), lambda n, e: (e, 0)),   # edge dst tile
                pl.BlockSpec((te, D), lambda n, e: (e, 0)),   # edge feature tile
            ],
            out_specs=pl.BlockSpec((tn, D), lambda n, e: (n, 0)),  # node block
            scratch_shapes=[pltpu.VMEM((tn, D), jnp.float32)],
        ),
        compiler_params=pltpu.CompilerParams(
            dimension_semantics=("parallel", "arbitrary"),
            vmem_limit_bytes=vmem_limit,
        ),
    )(dst2d, edge_feat)


class EdgewiseReduceJax:
    """JAX/Pallas port of allegro.nn._edgewise.EdgewiseReduce (reduce='sum')."""

    def __init__(self, field, out_field=None, normalize_edge_reduce=True,
                 avg_num_neighbors=None, reduce="sum"):
        assert reduce == "sum", "only 'sum' is implemented (Allegro default)"
        self.field = field
        self.out_field = f"{reduce}_{field}" if out_field is None else out_field
        self._factor = None
        if normalize_edge_reduce and avg_num_neighbors is not None:
            self._factor = 1.0 / math.sqrt(avg_num_neighbors)

    def __call__(self, data):
        edge_dst = data["edge_index"][0]
        num_nodes = data["pos"].shape[0]
        out = edgewise_reduce_sum(
            data[self.field], edge_dst, num_nodes, factor=self._factor)
        data = dict(data)
        data[self.out_field] = out
        return data


if __name__ == "__main__":
    key = jax.random.PRNGKey(0)
    k_feat, k_dst, k_pos = jax.random.split(key, 3)

    num_nodes = 6
    num_edges = 20
    feat_dim = 32
    avg_num_neighbors = 3.5

    edge_feat = jax.random.normal(k_feat, (num_edges, feat_dim), jnp.float32)
    edge_src = jax.random.randint(k_dst, (num_edges,), 0, num_nodes, jnp.int32)
    edge_dst = jax.random.randint(jax.random.fold_in(k_dst, 1),
                                  (num_edges,), 0, num_nodes, jnp.int32)
    edge_index = jnp.stack([edge_dst, edge_src], axis=0)   # (2, E), row 0 = dst
    pos = jax.random.normal(k_pos, (num_nodes, 3), jnp.float32)

    data = {
        "edge_index": edge_index,
        "pos": pos,
        "edge_features": edge_feat,
    }

    module = EdgewiseReduceJax(
        field="edge_features",
        normalize_edge_reduce=True,
        avg_num_neighbors=avg_num_neighbors,
        reduce="sum",
    )

    out_data = module(data)
    out = jax.block_until_ready(out_data["sum_edge_features"])

    # Reference check against plain-JAX segment_sum.
    ref = jax.ops.segment_sum(edge_feat, edge_dst, num_segments=num_nodes)
    ref = ref * (1.0 / math.sqrt(avg_num_neighbors))
    assert out.shape == (num_nodes, feat_dim)
    assert jnp.allclose(out, ref, atol=1e-5, rtol=1e-5), "mismatch vs reference"

    print("KERNEL_OK")
</pallas_src>

<mosaic_0001>
module attributes {stable_mosaic.version = 11 : i64} {
  func.func @_edgewise_scatter_sum_kernel(%arg0: i32, %arg1: i32, %arg2: memref<16x1xi32, #tpu.memory_space<vmem>>, %arg3: memref<16x32xf32, #tpu.memory_space<vmem>>, %arg4: memref<6x32xf32, #tpu.memory_space<vmem>>, %arg5: memref<6x32xf32, #tpu.memory_space<vmem>>) attributes {dimension_semantics = [#tpu.dimension_semantics<parallel>, #tpu.dimension_semantics<arbitrary>], iteration_bounds = array<i64: 1, 2>, scalar_prefetch = 0 : i64, scratch_operands = 1 : i64, tpu.core_type = #tpu.core_type<tc>, window_params = [{transform_indices = @transform_0, window_bounds = array<i64: 16, 1>}, {transform_indices = @transform_1, window_bounds = array<i64: 16, 32>}, {transform_indices = @transform_2, window_bounds = array<i64: 6, 32>}]} {
    %c0_i32 = arith.constant 0 : i32
    %0 = arith.cmpi eq, %arg1, %c0_i32 : i32
    %1 = arith.extui %0 : i1 to i32
    %c0_i32_0 = arith.constant 0 : i32
    %2 = arith.cmpi ne, %1, %c0_i32_0 : i32
    scf.if %2 {
      %cst_10 = arith.constant 0.000000e+00 : f32
      %33 = vector.broadcast %cst_10 : f32 to vector<6x32xf32>
      %c0_11 = arith.constant 0 : index
      %c0_12 = arith.constant 0 : index
      %34 = vector.load %arg5[%c0_11, %c0_12] : memref<6x32xf32, #tpu.memory_space<vmem>>, vector<6x32xf32>
      tpu.vector_store %arg5[%c0_11, %c0_12], %33 {strides = array<i32>} : memref<6x32xf32, #tpu.memory_space<vmem>>, vector<6x32xf32>,
    } else {
    }
    %c16_i32 = arith.constant 16 : i32
    %3 = arith.muli %arg1, %c16_i32 : i32
    %4 = tpu.iota {dimensions = array<i32: 0>} : vector<16x1xi32>
    %5 = vector.broadcast %3 : i32 to vector<16x1xi32>
    %6 = arith.addi %5, %4 : vector<16x1xi32>
    %c20_i32 = arith.constant 20 : i32
    %7 = vector.broadcast %c20_i32 : i32 to vector<16x1xi32>
    %8 = arith.cmpi slt, %6, %7 : vector<16x1xi32>
    %c0 = arith.constant 0 : index
    %c0_1 = arith.constant 0 : index
    %9 = vector.load %arg2[%c0, %c0_1] : memref<16x1xi32, #tpu.memory_space<vmem>>, vector<16x1xi32>
    %c-1_i32 = arith.constant -1 : i32
    %10 = vector.broadcast %c-1_i32 : i32 to vector<16x1xi32>
    %11 = arith.select %8, %9, %10 : vector<16x1xi1>, vector<16x1xi32>
    %c0_2 = arith.constant 0 : index
    %c0_3 = arith.constant 0 : index
    %12 = vector.load %arg3[%c0_2, %c0_3] : memref<16x32xf32, #tpu.memory_space<vmem>>, vector<16x32xf32>
    %c0_i32_4 = arith.constant 0 : i32
    %13 = arith.sitofp %c0_i32_4 : i32 to f32
    %14 = vector.shape_cast %8 : vector<16x1xi1> to vector<16x1xi1>
    %15 = vector.broadcast %14 : vector<16x1xi1> to vector<16x32xi1>
    %16 = vector.broadcast %13 : f32 to vector<16x32xf32>
    %17 = arith.select %15, %12, %16 : vector<16x32xi1>, vector<16x32xf32>
    %c6_i32 = arith.constant 6 : i32
    %18 = arith.muli %arg0, %c6_i32 : i32
    %19 = tpu.iota {dimensions = array<i32: 1>} : vector<16x6xi32>
    %20 = vector.broadcast %18 : i32 to vector<16x6xi32>
    %21 = arith.addi %20, %19 : vector<16x6xi32>
    %22 = vector.broadcast %11 : vector<16x1xi32> to vector<16x6xi32>
    %23 = arith.cmpi eq, %22, %21 : vector<16x6xi32>
    %24 = arith.extui %23 : vector<16x6xi1> to vector<16x6xi32>
    %25 = arith.sitofp %24 : vector<16x6xi32> to vector<16x6xf32>
    %c0_5 = arith.constant 0 : index
    %c0_6 = arith.constant 0 : index
    %26 = vector.load %arg5[%c0_5, %c0_6] : memref<6x32xf32, #tpu.memory_space<vmem>>, vector<6x32xf32>
    %cst = arith.constant dense<0.000000e+00> : vector<6x32xf32>
    %27 = tpu.matmul %25, %17, %cst {dimension_numbers = #tpu.dot_dimension_numbers<[0], [0], [1], [1], [0, 1, 1, 1], [], []>} : vector<16x6xf32>, vector<16x32xf32>, vector<6x32xf32> -> vector<6x32xf32>
    %28 = arith.addf %26, %27 : vector<6x32xf32>
    %c0_7 = arith.constant 0 : index
    %c0_8 = arith.constant 0 : index
    %29 = vector.load %arg5[%c0_7, %c0_8] : memref<6x32xf32, #tpu.memory_space<vmem>>, vector<6x32xf32>
    tpu.vector_store %arg5[%c0_7, %c0_8], %28 {strides = array<i32>} : memref<6x32xf32, #tpu.memory_space<vmem>>, vector<6x32xf32>,
    %c1_i32 = arith.constant 1 : i32
    %30 = arith.cmpi eq, %arg1, %c1_i32 : i32
    %31 = arith.extui %30 : i1 to i32
    %c0_i32_9 = arith.constant 0 : i32
    %32 = arith.cmpi ne, %31, %c0_i32_9 : i32
    scf.if %32 {
      %c0_10 = arith.constant 0 : index
      %c0_11 = arith.constant 0 : index
      %33 = vector.load %arg5[%c0_10, %c0_11] : memref<6x32xf32, #tpu.memory_space<vmem>>, vector<6x32xf32>
      %cst_12 = arith.constant 0.534522474 : f32
      %34 = vector.broadcast %cst_12 : f32 to vector<6x32xf32>
      %35 = arith.mulf %33, %34 : vector<6x32xf32>
      %c0_13 = arith.constant 0 : index
      %c0_14 = arith.constant 0 : index
      %36 = vector.load %arg4[%c0_13, %c0_14] : memref<6x32xf32, #tpu.memory_space<vmem>>, vector<6x32xf32>
      tpu.vector_store %arg4[%c0_13, %c0_14], %35 {strides = array<i32>} : memref<6x32xf32, #tpu.memory_space<vmem>>, vector<6x32xf32>,
    } else {
    }
    return
  }
  func.func @transform_0(%arg0: i32, %arg1: i32) -> (i32, i32) {
    %c0_i32 = arith.constant 0 : i32
    %c0_i32_0 = arith.constant 0 : i32
    return %arg1, %c0_i32 : i32, i32
  }
  func.func @transform_1(%arg0: i32, %arg1: i32) -> (i32, i32) {
    %c0_i32 = arith.constant 0 : i32
    %c0_i32_0 = arith.constant 0 : i32
    return %arg1, %c0_i32 : i32, i32
  }
  func.func @transform_2(%arg0: i32, %arg1: i32) -> (i32, i32) {
    %c0_i32 = arith.constant 0 : i32
    %c0_i32_0 = arith.constant 0 : i32
    return %arg0, %c0_i32 : i32, i32
  }
}

</mosaic_0001>

<bundles_post_ra>
// kernel: tpu_custom_call.1
= control target key start
LH: loop header
LB: loop body
LE: loop exit
PB: predicated region body
PF: predicated region fallthrough
CT: control target
= control target key end

     0   :  { %7 = vsyncpa [#allocation4], 0  ;;  %s525_s9 = smov 0   ;;  %s527_s10 = smov 0   ;;  %s570_s0 = inlined_call_operand.vmem [shape: s32[20,1], index: 0, kind: input, shape index: {}]   ;;  %s571_s1 = inlined_call_operand.vmem [shape: f32[20,32], index: 1, kind: input, shape index: {}]   ;;  %s572_s2 = inlined_call_operand.hbm [shape: f32[6,32], index: 2, kind: output, shape index: {}]  }
   0x1   :  { %s529_s11 = smov 0  }
   0x2 LB: > { %s395_s12 = sadd.s32 4294967295, %s504_s11   ;;  %s22_s13 = sadd.s32 1, %s500_s10  ;;  %s504_s11 = sphi %s529_s11, %s13_s11   ;;  %s500_s10 = sphi %s527_s10, %s574_s10   ;;  %s496_s9 = sphi %s525_s9, %s573_s9  }
   0x3   : > { %p23_p0 = scmp.ge.s32.totalorder %s22_s13, 2  ;;  %p398_p1 = scmp.ge.s32.totalorder %s504_s11, 1 }
   0x4   : > { %p153_p2 = scmp.lt.s32.totalorder %s504_s11, 3 }
   0x5   : > { %s576_s13 = smov (%p23_p0, %s22_s13), 0 }
   0x6   : > { %p154_p3 = pnand %p398_p1, %p153_p2 }
   0x7   : > { %s399_s14 = sshll.u32 (!%p154_p3), %s496_s9, 1  ;;  %p403_p5 = scmp.ne.s32.totalorder (!%p154_p3), %s496_s9, 0 }
   0x8   : > { %157 = sbr.rel (%p154_p3) target bundleno = 455 (0x1c7), region = 28  ;;  %p188_p4 = scmp.lt.s32.totalorder (!%p154_p3), %s399_s14, 2 }
   0xd   : > { %s578_s14 = smov (!%p188_p4, %s399_s14), 2  ;;  %214 = sbr.rel (%p403_p5) target bundleno = 20 (0x14), region = 32 }
   0xe   : > { %s400_s15 = sshll.u32 %s578_s14, 3 }
   0xf   : > { %s191_s18 = scalar_lea.vmem %s570_s0, %s400_s15  ;;  %s205_s21 = scalar_lea.vmem %s571_s1, %s400_s15 }
  0x12   : > { %vm215_vm0 = vcmask 259072   ;;  %v506_v0 = vmov 0.0  }
  0x13   : > { %216 = vst.msk [vmem:[#allocation2] sm:$0x3f] %vm215_vm0, %v506_v0 }
  0x14 PF: > { %s404_s22 = sshll.u32 %s496_s9, 4  ;;  %v218_v1 = vlaneseq  ;;  %v507_v2 = vmov 0   ;;  %v226_v6 = vld [vmem:[%s191_s18] sm:$0xff]  ;;  %v227_v10 = vld [vmem:[%s191_s18 + $0x8] sm:$0xff]  ;;  %v508_v16 = vmov 0.0   ;;  %vm288_vm5 = vcmask 130048  }
  0x15   : > { %449 = vset.pattern.permute.xlu0 %v507_v2  ;;  %v221_v3 = vstv %s404_s22  ;;  %v231_v12 = vld [vmem:[%s205_s21 + $0x8] sm:$0xff]  ;;  %v230_v13 = vld [vmem:[%s205_s21] sm:$0xff]  ;;  %vm313_vm6 = vcmask 259072   ;;  %p410_p6 = scmp.ne.s32.totalorder %s496_s9, 1 }
  0x16   : > { %v219_v4 = vshrl.u32 %v218_v1, 7  ;;  %v240_v14 = vand.u32 127, %v218_v1 }
  0x18   : > { %v222_v5 = vadd.s32 %v221_v3, %v219_v4  ;;  %v220_v7 = vadd.s32 8, %v219_v4 }
  0x1a   : > { %vm224_vm1 = vcmp.lt.s32.totalorder %v222_v5, 20  ;;  %v223_v8 = vadd.s32 %v221_v3, %v220_v7  ;;  %v255_v21 = vld [vmem:[#allocation2] sm:$0x3f] }
  0x1b   : > { %v228_v9 = vsel %vm224_vm1, %v226_v6, 4294967295 }
  0x1c   : > { %244 = vperm.xlu0 %449, %v228_v9   ;;  %vm225_vm2 = vcmp.lt.s32.totalorder %v223_v8, 20 }
  0x1d   : > { %v229_v11 = vsel %vm225_vm2, %v227_v10, 4294967295  ;;  %407 = vmatpush.msk.msra.mxu0 %vm225_vm2, %v231_v12 }
  0x1f   : > { %408 = vmatpush.msk.msra.mxu0 %vm224_vm1, %v230_v13 }
  0x24   : > { %247 = vperm.xlu0 %449, %v229_v11  }
  0x8e   : > { %v245_v15 = vpop.permute.xlu0 %244 }
  0x8f   : > { %vm249_vm3 = vcmp.eq.s32.totalorder %v245_v15, %v240_v14 }
  0x90   : > { %v405_v17 = vsel %vm249_vm3, 1.0, %v508_v16 }
  0x91   : > { %256 = vxpose.xlu1.b32.start [1/2] (short) (narrow) %v405_v17, 8 }
  0x96   : > { %v248_v18 = vpop.permute.xlu0 %247 }
  0x97   : > { %vm250_vm4 = vcmp.eq.s32.totalorder %v248_v18, %v240_v14 }
  0x98   : > { %v406_v19 = vsel %vm250_vm4, 1.0, %v508_v16 }
  0x99   : > { %257 = vxpose.xlu1.b32.end [2/2] (short) (narrow) %v406_v19, 8 }
 0x135   : > { %v272_v20 = vpop.trf.xlu1 }
 0x136   : > { %409 = vmatmul.msk.f32.vlgmr.msra.gmra.mxu0 %vm288_vm5, %v272_v20 }
 0x1b2   : > { %318 = sbr.rel (%p410_p6) target bundleno = 449 (0x1c1), region = 36 }
 0x1b3   : > { %v309_v22 = vpop.f32.mrf.mxu0 }
 0x1b4   : > { %v312_v23 = vadd.f32 %v309_v22, %v255_v21 }
 0x1b6   : > { %314 = vst.msk [vmem:[#allocation2] sm:$0x3f] %vm313_vm6, %v312_v23 }
 0x1bd   : > { %v319_v24 = vld [vmem:[#allocation2] sm:$0x3f] }
 0x1be   : > { %v320_v25 = vmul.f32 0.5345225, %v319_v24 }
 0x1c0   : > { %321 = vst.msk [vmem:[#allocation3] sm:$0x3f] %vm313_vm6, %v320_v25 }
 0x1c1 PF: > { %p419_p7 = scmp.eq.s32.totalorder %s395_s12, 1  ;;  %s332_s25 = sshll.u32 %s572_s2, 4  ;;  %s333_s25 = int_to_ptr.hbm [resolvable:$true] %s332_s25 }
 0x1c2   : > { %s509_s26 = smov [#allocation3]  }
 0x1c3   : > { %s330_s27 = sshll.u32 %s509_s26, 4  ;;  %s331_s27 = int_to_ptr.vmem [resolvable:$true] %s330_s27 }
 0x1c4   : > { %416 = dma.vmem_to_hbm [thread:$0]  (%p419_p7), %s331_s27, 128, %s333_s25, [#allocation4]  }
 0x1c5   : > { %491 = dma.done.wait (%p419_p7), [#allocation4], 128  }
 0x1c6   : > { %493 = vsyncadd (%p419_p7), [#allocation4], 4294967168 }
 0x1c7 PF: > { %s13_s11 = sadd.s32 1, %s504_s11   ;;  %s573_s9 = smov %s500_s10 }
 0x1c8   : > { %p10_p8 = scmp.ge.s32.totalorder %s13_s11, 4   ;;  %s574_s10 = smov %s576_s13 }
 0x1ca   :  { %12 = sbr.rel (!%p10_p8) target bundleno = 2 (0x2), region = 67 }
 0x1cf   :  { %346 = vsyncpa [#allocation4], 1 }
 0x1d0   :  { %348 = vsyncpa [#allocation4 + $0x1], 1 }

</bundles_post_ra>
